<compile_context>
chip_gen: v7x
topology: tpu7x:2x2x1
jax: 0.10.0
libtpu: 0.0.40
codegen_flags: <defaults>
</compile_context>

<pallas_src>
import jax
import jax.numpy as jnp
from jax import lax
from jax.experimental import pallas as pl
from jax.experimental.pallas import tpu as pltpu


# ---------------------------------------------------------------------------
# Fused kernel
# ---------------------------------------------------------------------------
def _make_fused_kernel(n_branch_layers, n_trunk_layers):
    """Build a fused DeepONet forward kernel for a fixed layer count.

    Ref order: x_func, x_loc,
               branch (w0, b0, w1, b1, ...),
               trunk  (w0, b0, w1, b1, ...),
               b_scalar (SMEM), out.
    """

    def _mlp(x, param_refs, n_layers, final_act):
        for li in range(n_layers):
            w = param_refs[2 * li][...]
            b = param_refs[2 * li + 1][...]
            # x @ W on the MXU, f32 accumulation; bias added once per layer.
            x = lax.dot_general(
                x, w,
                dimension_numbers=(((1,), (0,)), ((), ())),
                preferred_element_type=jnp.float32,
            ) + b
            if li < n_layers - 1 or final_act:
                x = jnp.tanh(x)  # EUP slot
        return x

    def kernel(*refs):
        idx = 0
        xf_ref = refs[idx]; idx += 1
        xl_ref = refs[idx]; idx += 1
        branch_refs = refs[idx: idx + 2 * n_branch_layers]
        idx += 2 * n_branch_layers
        trunk_refs = refs[idx: idx + 2 * n_trunk_layers]
        idx += 2 * n_trunk_layers
        b_ref = refs[idx]; idx += 1
        o_ref = refs[idx]

        # Branch net: tanh on hidden layers, linear last layer.
        f = _mlp(xf_ref[...], branch_refs, n_branch_layers, final_act=False)
        # Trunk net: tanh on hidden layers, then activation_trunk (tanh) on top
        # of the last layer -> final_act=True (fused, no separate XLA op).
        t = _mlp(xl_ref[...], trunk_refs, n_trunk_layers, final_act=True)

        # out[b, n] = sum_i f[b, i] * t[n, i]  -- contract last dims directly,
        # no transpose materialized.
        out = lax.dot_general(
            f, t,
            dimension_numbers=(((1,), (1,)), ((), ())),
            preferred_element_type=jnp.float32,
        )
        o_ref[...] = (out + b_ref[0, 0]).astype(o_ref.dtype)

    return kernel


# ---------------------------------------------------------------------------
# Wrapper
# ---------------------------------------------------------------------------
def deeponet_forward(x_func, x_loc, branch_params, trunk_params, b_scalar,
                     *, tb=None, tn=None):
    """DeepONetCartesianProd.forward (base_model='MLP', activation=tanh).

    x_func: (B, D_branch), x_loc: (N, D_trunk), b_scalar: (1, 1) -> (B, N).
    """
    B, Db = x_func.shape
    N, Dt = x_loc.shape
    p_branch = branch_params[-1][0].shape[1]
    p_trunk = trunk_params[-1][0].shape[1]
    assert p_branch == p_trunk, (
        "Output sizes of branch net and trunk net do not match.")

    # Tile sizes: whole array when small (single grid point); (8,128)-aligned
    # tiles when large so the 2-D grid double-buffers x_func / x_loc rows and
    # splits across TensorCores.
    if tb is None:
        tb = B if B <= 512 else 256
    if tn is None:
        tn = N if N <= 1024 else 512

    grid = (pl.cdiv(B, tb), pl.cdiv(N, tn))

    in_specs = [
        pl.BlockSpec((tb, Db), lambda i, j: (i, 0)),   # x_func rows per i-tile
        pl.BlockSpec((tn, Dt), lambda i, j: (j, 0)),   # x_loc rows per j-tile
    ]
    flat_params = []
    for w, b in list(branch_params) + list(trunk_params):
        in_specs.append(pl.BlockSpec(w.shape, lambda i, j: (0, 0)))
        in_specs.append(pl.BlockSpec(b.shape, lambda i, j: (0, 0)))
        flat_params.append(w)
        flat_params.append(b)
    # Scalar output bias lives in SMEM (whole array, untiled).
    in_specs.append(pl.BlockSpec(memory_space=pltpu.SMEM))

    kernel = _make_fused_kernel(len(branch_params), len(trunk_params))

    return pl.pallas_call(
        kernel,
        out_shape=jax.ShapeDtypeStruct((B, N), jnp.float32),
        grid=grid,
        in_specs=in_specs,
        out_specs=pl.BlockSpec((tb, tn), lambda i, j: (i, j)),
        compiler_params=pltpu.CompilerParams(
            dimension_semantics=("parallel", "parallel")),
    )(x_func, x_loc, *flat_params, b_scalar)


# ---------------------------------------------------------------------------
# Deterministic parameter construction (Glorot-normal weights, zero biases)
# ---------------------------------------------------------------------------
def make_mlp_params(key, layer_sizes):
    params = []
    for i in range(1, len(layer_sizes)):
        key, sub = jax.random.split(key)
        fan_in, fan_out = layer_sizes[i - 1], layer_sizes[i]
        std = (2.0 / (fan_in + fan_out)) ** 0.5
        w = std * jax.random.normal(sub, (fan_in, fan_out), dtype=jnp.float32)
        b = jnp.zeros((1, fan_out), dtype=jnp.float32)
        params.append((w, b))
    return params, key


if __name__ == "__main__":
    # Small shapes consistent with the module:
    #   branch net : [16, 32, 32]  (input dim 16, latent p = 32)
    #   trunk  net : [ 8, 32, 32]  (input dim 8,  latent p = 32)
    layer_sizes_branch = [16, 32, 32]
    layer_sizes_trunk = [8, 32, 32]
    B = 4   # number of function samples
    N = 8   # number of evaluation locations

    key = jax.random.PRNGKey(0)
    branch_params, key = make_mlp_params(key, layer_sizes_branch)
    trunk_params, key = make_mlp_params(key, layer_sizes_trunk)
    b_scalar = jnp.zeros((1, 1), dtype=jnp.float32)  # self.b = Parameter(0.0)

    key, k1, k2 = jax.random.split(key, 3)
    x_func = jax.random.normal(k1, (B, layer_sizes_branch[0]), dtype=jnp.float32)
    x_loc = jax.random.normal(k2, (N, layer_sizes_trunk[0]), dtype=jnp.float32)

    out = deeponet_forward(x_func, x_loc, branch_params, trunk_params, b_scalar)
    out = jax.block_until_ready(out)

    # Pure-JAX reference check (same math outside Pallas).
    def ref_mlp(x, params):
        for i, (w, b) in enumerate(params):
            x = x @ w + b
            if i < len(params) - 1:
                x = jnp.tanh(x)
        return x

    ref = jnp.einsum(
        "bi,ni->bn",
        ref_mlp(x_func, branch_params),
        jnp.tanh(ref_mlp(x_loc, trunk_params)),
    ) + b_scalar[0, 0]

    assert out.shape == (B, N)
    assert jnp.allclose(out, ref, atol=1e-5, rtol=1e-5)
    print("KERNEL_OK")
</pallas_src>

<mosaic_0001>
module attributes {stable_mosaic.version = 11 : i64} {
  func.func @kernel(%arg0: i32, %arg1: i32, %arg2: memref<4x16xf32, #tpu.memory_space<vmem>>, %arg3: memref<8x8xf32, #tpu.memory_space<vmem>>, %arg4: memref<16x32xf32, #tpu.memory_space<vmem>>, %arg5: memref<1x32xf32, #tpu.memory_space<vmem>>, %arg6: memref<32x32xf32, #tpu.memory_space<vmem>>, %arg7: memref<1x32xf32, #tpu.memory_space<vmem>>, %arg8: memref<8x32xf32, #tpu.memory_space<vmem>>, %arg9: memref<1x32xf32, #tpu.memory_space<vmem>>, %arg10: memref<32x32xf32, #tpu.memory_space<vmem>>, %arg11: memref<1x32xf32, #tpu.memory_space<vmem>>, %arg12: memref<1x1xf32, #tpu.memory_space<smem>>, %arg13: memref<4x8xf32, #tpu.memory_space<vmem>>) attributes {dimension_semantics = [#tpu.dimension_semantics<parallel>, #tpu.dimension_semantics<parallel>], iteration_bounds = array<i64: 1, 1>, scalar_prefetch = 0 : i64, scratch_operands = 0 : i64, tpu.core_type = #tpu.core_type<tc>, window_params = [{transform_indices = @transform_0, window_bounds = array<i64: 4, 16>}, {transform_indices = @transform_1, window_bounds = array<i64: 8, 8>}, {pipeline_mode = #tpu.pipeline_mode<synchronous>, transform_indices = @transform_2, window_bounds = array<i64: 16, 32>}, {pipeline_mode = #tpu.pipeline_mode<synchronous>, transform_indices = @transform_3, window_bounds = array<i64: 1, 32>}, {pipeline_mode = #tpu.pipeline_mode<synchronous>, transform_indices = @transform_4, window_bounds = array<i64: 32, 32>}, {pipeline_mode = #tpu.pipeline_mode<synchronous>, transform_indices = @transform_5, window_bounds = array<i64: 1, 32>}, {pipeline_mode = #tpu.pipeline_mode<synchronous>, transform_indices = @transform_6, window_bounds = array<i64: 8, 32>}, {pipeline_mode = #tpu.pipeline_mode<synchronous>, transform_indices = @transform_7, window_bounds = array<i64: 1, 32>}, {pipeline_mode = #tpu.pipeline_mode<synchronous>, transform_indices = @transform_8, window_bounds = array<i64: 32, 32>}, {pipeline_mode = #tpu.pipeline_mode<synchronous>, transform_indices = @transform_9, window_bounds = array<i64: 1, 32>}, {transform_indices = @transform_10, window_bounds = array<i64: 1, 1>}, {transform_indices = @transform_11, window_bounds = array<i64: 4, 8>}]} {
    %c0 = arith.constant 0 : index
    %c0_0 = arith.constant 0 : index
    %0 = vector.load %arg2[%c0, %c0_0] : memref<4x16xf32, #tpu.memory_space<vmem>>, vector<4x16xf32>
    %c0_1 = arith.constant 0 : index
    %c0_2 = arith.constant 0 : index
    %1 = vector.load %arg4[%c0_1, %c0_2] : memref<16x32xf32, #tpu.memory_space<vmem>>, vector<16x32xf32>
    %c0_3 = arith.constant 0 : index
    %c0_4 = arith.constant 0 : index
    %2 = vector.load %arg5[%c0_3, %c0_4] : memref<1x32xf32, #tpu.memory_space<vmem>>, vector<1x32xf32>
    %cst = arith.constant dense<0.000000e+00> : vector<4x32xf32>
    %3 = tpu.matmul %0, %1, %cst {dimension_numbers = #tpu.dot_dimension_numbers<[1], [0], [0], [1], [0, 0, 1, 1], [], []>} : vector<4x16xf32>, vector<16x32xf32>, vector<4x32xf32> -> vector<4x32xf32>
    %4 = vector.broadcast %2 : vector<1x32xf32> to vector<4x32xf32>
    %5 = arith.addf %3, %4 : vector<4x32xf32>
    %6 = math.tanh %5 : vector<4x32xf32>
    %c0_5 = arith.constant 0 : index
    %c0_6 = arith.constant 0 : index
    %7 = vector.load %arg6[%c0_5, %c0_6] : memref<32x32xf32, #tpu.memory_space<vmem>>, vector<32x32xf32>
    %c0_7 = arith.constant 0 : index
    %c0_8 = arith.constant 0 : index
    %8 = vector.load %arg7[%c0_7, %c0_8] : memref<1x32xf32, #tpu.memory_space<vmem>>, vector<1x32xf32>
    %cst_9 = arith.constant dense<0.000000e+00> : vector<4x32xf32>
    %9 = tpu.matmul %6, %7, %cst_9 {dimension_numbers = #tpu.dot_dimension_numbers<[1], [0], [0], [1], [0, 0, 1, 1], [], []>} : vector<4x32xf32>, vector<32x32xf32>, vector<4x32xf32> -> vector<4x32xf32>
    %10 = vector.broadcast %8 : vector<1x32xf32> to vector<4x32xf32>
    %11 = arith.addf %9, %10 : vector<4x32xf32>
    %c0_10 = arith.constant 0 : index
    %c0_11 = arith.constant 0 : index
    %12 = vector.load %arg3[%c0_10, %c0_11] : memref<8x8xf32, #tpu.memory_space<vmem>>, vector<8x8xf32>
    %c0_12 = arith.constant 0 : index
    %c0_13 = arith.constant 0 : index
    %13 = vector.load %arg8[%c0_12, %c0_13] : memref<8x32xf32, #tpu.memory_space<vmem>>, vector<8x32xf32>
    %c0_14 = arith.constant 0 : index
    %c0_15 = arith.constant 0 : index
    %14 = vector.load %arg9[%c0_14, %c0_15] : memref<1x32xf32, #tpu.memory_space<vmem>>, vector<1x32xf32>
    %cst_16 = arith.constant dense<0.000000e+00> : vector<8x32xf32>
    %15 = tpu.matmul %12, %13, %cst_16 {dimension_numbers = #tpu.dot_dimension_numbers<[1], [0], [0], [1], [0, 0, 1, 1], [], []>} : vector<8x8xf32>, vector<8x32xf32>, vector<8x32xf32> -> vector<8x32xf32>
    %16 = vector.broadcast %14 : vector<1x32xf32> to vector<8x32xf32>
    %17 = arith.addf %15, %16 : vector<8x32xf32>
    %18 = math.tanh %17 : vector<8x32xf32>
    %c0_17 = arith.constant 0 : index
    %c0_18 = arith.constant 0 : index
    %19 = vector.load %arg10[%c0_17, %c0_18] : memref<32x32xf32, #tpu.memory_space<vmem>>, vector<32x32xf32>
    %c0_19 = arith.constant 0 : index
    %c0_20 = arith.constant 0 : index
    %20 = vector.load %arg11[%c0_19, %c0_20] : memref<1x32xf32, #tpu.memory_space<vmem>>, vector<1x32xf32>
    %cst_21 = arith.constant dense<0.000000e+00> : vector<8x32xf32>
    %21 = tpu.matmul %18, %19, %cst_21 {dimension_numbers = #tpu.dot_dimension_numbers<[1], [0], [0], [1], [0, 0, 1, 1], [], []>} : vector<8x32xf32>, vector<32x32xf32>, vector<8x32xf32> -> vector<8x32xf32>
    %22 = vector.broadcast %20 : vector<1x32xf32> to vector<8x32xf32>
    %23 = arith.addf %21, %22 : vector<8x32xf32>
    %24 = math.tanh %23 : vector<8x32xf32>
    %cst_22 = arith.constant dense<0.000000e+00> : vector<4x8xf32>
    %25 = tpu.matmul %11, %24, %cst_22 {dimension_numbers = #tpu.dot_dimension_numbers<[1], [1], [0], [0], [0, 0, 1, 0], [], []>} : vector<4x32xf32>, vector<8x32xf32>, vector<4x8xf32> -> vector<4x8xf32>
    %c0_23 = arith.constant 0 : index
    %c0_24 = arith.constant 0 : index
    %26 = memref.load %arg12[%c0_23, %c0_24] : memref<1x1xf32, #tpu.memory_space<smem>>
    %27 = vector.broadcast %26 : f32 to vector<4x8xf32>
    %28 = arith.addf %25, %27 : vector<4x8xf32>
    %c0_25 = arith.constant 0 : index
    %c0_26 = arith.constant 0 : index
    %29 = vector.load %arg13[%c0_25, %c0_26] : memref<4x8xf32, #tpu.memory_space<vmem>>, vector<4x8xf32>
    tpu.vector_store %arg13[%c0_25, %c0_26], %28 {strides = array<i32>} : memref<4x8xf32, #tpu.memory_space<vmem>>, vector<4x8xf32>,
    return
  }
  func.func @transform_0(%arg0: i32, %arg1: i32) -> (i32, i32) {
    %c0_i32 = arith.constant 0 : i32
    %c0_i32_0 = arith.constant 0 : i32
    return %arg0, %c0_i32 : i32, i32
  }
  func.func @transform_1(%arg0: i32, %arg1: i32) -> (i32, i32) {
    %c0_i32 = arith.constant 0 : i32
    %c0_i32_0 = arith.constant 0 : i32
    return %arg1, %c0_i32 : i32, i32
  }
  func.func @transform_2(%arg0: i32, %arg1: i32) -> (i32, i32) {
    %c0_i32 = arith.constant 0 : i32
    %c0_i32_0 = arith.constant 0 : i32
    %c0_i32_1 = arith.constant 0 : i32
    return %c0_i32, %c0_i32_0 : i32, i32
  }
  func.func @transform_3(%arg0: i32, %arg1: i32) -> (i32, i32) {
    %c0_i32 = arith.constant 0 : i32
    %c0_i32_0 = arith.constant 0 : i32
    %c0_i32_1 = arith.constant 0 : i32
    return %c0_i32, %c0_i32_0 : i32, i32
  }
  func.func @transform_4(%arg0: i32, %arg1: i32) -> (i32, i32) {
    %c0_i32 = arith.constant 0 : i32
    %c0_i32_0 = arith.constant 0 : i32
    %c0_i32_1 = arith.constant 0 : i32
    return %c0_i32, %c0_i32_0 : i32, i32
  }
  func.func @transform_5(%arg0: i32, %arg1: i32) -> (i32, i32) {
    %c0_i32 = arith.constant 0 : i32
    %c0_i32_0 = arith.constant 0 : i32
    %c0_i32_1 = arith.constant 0 : i32
    return %c0_i32, %c0_i32_0 : i32, i32
  }
  func.func @transform_6(%arg0: i32, %arg1: i32) -> (i32, i32) {
    %c0_i32 = arith.constant 0 : i32
    %c0_i32_0 = arith.constant 0 : i32
    %c0_i32_1 = arith.constant 0 : i32
    return %c0_i32, %c0_i32_0 : i32, i32
  }
  func.func @transform_7(%arg0: i32, %arg1: i32) -> (i32, i32) {
    %c0_i32 = arith.constant 0 : i32
    %c0_i32_0 = arith.constant 0 : i32
    %c0_i32_1 = arith.constant 0 : i32
    return %c0_i32, %c0_i32_0 : i32, i32
  }
  func.func @transform_8(%arg0: i32, %arg1: i32) -> (i32, i32) {
    %c0_i32 = arith.constant 0 : i32
    %c0_i32_0 = arith.constant 0 : i32
    %c0_i32_1 = arith.constant 0 : i32
    return %c0_i32, %c0_i32_0 : i32, i32
  }
  func.func @transform_9(%arg0: i32, %arg1: i32) -> (i32, i32) {
    %c0_i32 = arith.constant 0 : i32
    %c0_i32_0 = arith.constant 0 : i32
    %c0_i32_1 = arith.constant 0 : i32
    return %c0_i32, %c0_i32_0 : i32, i32
  }
  func.func @transform_10(%arg0: i32, %arg1: i32) -> (i32, i32) {
    %c0_i32 = arith.constant 0 : i32
    %c0_i32_0 = arith.constant 0 : i32
    %c0_i32_1 = arith.constant 0 : i32
    return %c0_i32, %c0_i32_0 : i32, i32
  }
  func.func @transform_11(%arg0: i32, %arg1: i32) -> (i32, i32) {
    %c0_i32 = arith.constant 0 : i32
    return %arg0, %arg1 : i32, i32
  }
}

</mosaic_0001>

<bundles_post_ra>
// kernel: tpu_custom_call.1
= control target key start
LH: loop header
LB: loop body
LE: loop exit
PB: predicated region body
PF: predicated region fallthrough
CT: control target
= control target key end

     0   :  { %17 = vsyncpa [#allocation4], 0  ;;  %s1009_s0 = inlined_call_operand.hbm [shape: f32[4,16], index: 0, kind: input, shape index: {}]   ;;  %s1010_s1 = inlined_call_operand.hbm [shape: f32[8,8], index: 1, kind: input, shape index: {}]   ;;  %s1011_s2 = inlined_call_operand.hbm [shape: f32[16,32], index: 2, kind: input, shape index: {}]   ;;  %s1012_s3 = inlined_call_operand.vmem [shape: f32[1,32], index: 3, kind: input, shape index: {}]   ;;  %s1013_s4 = inlined_call_operand.hbm [shape: f32[32,32], index: 4, kind: input, shape index: {}]   ;;  %s1014_s5 = inlined_call_operand.vmem [shape: f32[1,32], index: 5, kind: input, shape index: {}]   ;;  %s1015_s6 = inlined_call_operand.hbm [shape: f32[8,32], index: 6, kind: input, shape index: {}]   ;;  %s1016_s7 = inlined_call_operand.hbm [shape: f32[1,32], index: 7, kind: input, shape index: {}]   ;;  %s1017_s8 = inlined_call_operand.vmem [shape: f32[32,32], index: 8, kind: input, shape index: {}]   ;;  %s1018_s9 = inlined_call_operand.vmem [shape: f32[1,32], index: 9, kind: input, shape index: {}]   ;;  %s1019_s10 = inlined_call_operand.<no memory space> [shape: f32[1,1], index: 10, kind: input, shape index: {}]   ;;  %s1020_s11 = inlined_call_operand.hbm [shape: f32[4,8], index: 11, kind: output, shape index: {}]  }
   0x1   :  { %18 = vsyncpa [#allocation7], 0 }
   0x2   :  { %19 = vsyncpa [#allocation10], 0 }
   0x3   :  { %20 = vsyncpa [#allocation13], 0 }
   0x4   :  { %21 = vsyncpa [#allocation5], 0  ;;  %s814_s17 = smov [#allocation6]   ;;  %s650_s21 = scalar_lea.hbm %s1010_s1, 128 }
   0x5   :  { %s38_s18 = sshll.u32 %s814_s17, 4  ;;  %p651_p0 = scmp.ne.s32.totalorder %s1010_s1, %s650_s21  ;;  %s39_s18 = int_to_ptr.vmem [resolvable:$true] %s38_s18 }
   0x6   :  { %p654_p1 = scmp.lt.u32.totalorder %s650_s21, %s1010_s1 }
   0x8   :  { %p656_p2 = pnand %p654_p1, %p651_p0 }
   0xa   :  { %659 = shalt.err (!%p656_p2)
}
   0xb   :  { %s660_s26 = scalar_lea.vmem %s39_s18, 128  ;;  %p665_p4 = scmp.lt.s32.totalorder %s39_s18, %s39_s18 }
   0xc   :  { %p661_p3 = scmp.ne.s32.totalorder %s39_s18, %s660_s26  ;;  %p666_p5 = scmp.lt.s32.totalorder %s660_s26, %s660_s26 }
   0xe   :  { %p667_p6 = por %p666_p5, %p665_p4 }
  0x10   :  { %p668_p7 = pnand %p667_p6, %p661_p3 }
  0x12   :  { %671 = shalt.err (!%p668_p7)
}
  0x13   :  { %41 = dma.hbm_to_vmem [thread:$0]  %s1010_s1, 128, %s39_s18, [#allocation7]  }
  0x14   :  { %s815_s29 = smov [#allocation9]   ;;  %s816_s12 = smov [#allocation3]  }
  0x15   :  { %s61_s30 = sshll.u32 %s815_s29, 4  ;;  %s28_s13 = sshll.u32 %s816_s12, 4  ;;  %s62_s30 = int_to_ptr.vmem [resolvable:$true] %s61_s30  ;;  %s29_s13 = int_to_ptr.vmem [resolvable:$true] %s28_s13 }
  0x16   :  { %s672_s16 = scalar_lea.hbm %s1013_s4, 512 }
  0x17   :  { %p673_p8 = scmp.ne.s32.totalorder %s1013_s4, %s672_s16  ;;  %p676_p9 = scmp.lt.u32.totalorder %s672_s16, %s1013_s4 }
  0x19   :  { %p678_p10 = pnand %p676_p9, %p673_p8 }
  0x1b   :  { %681 = shalt.err (!%p678_p10)
}
  0x1c   :  { %s682_s1 = scalar_lea.vmem %s62_s30, 512  ;;  %p687_p12 = scmp.lt.s32.totalorder %s62_s30, %s62_s30 }
  0x1d   :  { %p683_p11 = scmp.ne.s32.totalorder %s62_s30, %s682_s1  ;;  %p688_p13 = scmp.lt.s32.totalorder %s682_s1, %s682_s1 }
  0x1f   :  { %p689_p0 = por %p688_p13, %p687_p12 }
  0x21   :  { %p690_p1 = pnand %p689_p0, %p683_p11 }
  0x23   :  { %693 = shalt.err (!%p690_p1)
}
  0x24   :  { %s817_s18 = smov 128   ;;  %s818_s22 = smov 8  }
  0x25   :  { %67 = dma.hbm_to_vmem [thread:$0]  %s1013_s4, 512, %s62_s30, [#allocation10], %s817_s18, %s817_s18, %s818_s22  }
  0x26   :  { %s694_s27 = scalar_lea.hbm %s1009_s0, 64 }
  0x27   :  { %p695_p2 = scmp.ne.s32.totalorder %s1009_s0, %s694_s27  ;;  %p698_p3 = scmp.lt.u32.totalorder %s694_s27, %s1009_s0 }
  0x29   :  { %p700_p4 = pnand %p698_p3, %p695_p2 }
  0x2b   :  { %703 = shalt.err (!%p700_p4)
}
  0x2c   :  { %s704_s15 = scalar_lea.vmem %s29_s13, 64  ;;  %p709_p6 = scmp.lt.s32.totalorder %s29_s13, %s29_s13 }
  0x2d   :  { %p705_p5 = scmp.ne.s32.totalorder %s29_s13, %s704_s15  ;;  %p710_p7 = scmp.lt.s32.totalorder %s704_s15, %s704_s15 }
  0x2f   :  { %p711_p8 = por %p710_p7, %p709_p6 }
  0x31   :  { %p712_p9 = pnand %p711_p8, %p705_p5 }
  0x33   :  { %715 = shalt.err (!%p712_p9)
}
  0x34   :  { %31 = dma.hbm_to_vmem [thread:$0]  %s1009_s0, 64, %s29_s13, [#allocation4]  }
  0x35   :  { %s819_s16 = smov [#allocation8]   ;;  %s820_s19 = smov [#allocation11]  }
  0x36   :  { %s47_s17 = sshll.u32 %s819_s16, 4  ;;  %s76_s20 = sshll.u32 %s820_s19, 4  ;;  %s48_s17 = int_to_ptr.vmem [resolvable:$true] %s47_s17  ;;  %s77_s20 = int_to_ptr.vmem [resolvable:$true] %s76_s20 }
  0x37   :  { %s716_s23 = scalar_lea.hbm %s1011_s2, 256 }
  0x38   :  { %p717_p10 = scmp.ne.s32.totalorder %s1011_s2, %s716_s23  ;;  %p720_p11 = scmp.lt.u32.totalorder %s716_s23, %s1011_s2 }
  0x3a   :  { %p722_p12 = pnand %p720_p11, %p717_p10 }
  0x3c   :  { %725 = shalt.err (!%p722_p12)
}
  0x3d   :  { %s726_s0 = scalar_lea.vmem %s48_s17, 256  ;;  %p731_p0 = scmp.lt.s32.totalorder %s48_s17, %s48_s17 }
  0x3e   :  { %p727_p13 = scmp.ne.s32.totalorder %s48_s17, %s726_s0  ;;  %p732_p1 = scmp.lt.s32.totalorder %s726_s0, %s726_s0 }
  0x40   :  { %p733_p2 = por %p732_p1, %p731_p0 }
  0x42   :  { %p734_p3 = pnand %p733_p2, %p727_p13 }
  0x44   :  { %737 = shalt.err (!%p734_p3)
}
  0x45   :  { %53 = dma.hbm_to_vmem [thread:$0]  %s1011_s2, 256, %s48_s17, [#allocation7], %s817_s18, %s817_s18, %s818_s22  }
  0x46   :  { %s738_s14 = scalar_lea.hbm %s1015_s6, 128 }
  0x47   :  { %p739_p4 = scmp.ne.s32.totalorder %s1015_s6, %s738_s14  ;;  %p742_p5 = scmp.lt.u32.totalorder %s738_s14, %s1015_s6 }
  0x49   :  { %p744_p6 = pnand %p742_p5, %p739_p4 }
  0x4b   :  { %747 = shalt.err (!%p744_p6)
}
  0x4c   :  { %s748_s19 = scalar_lea.vmem %s77_s20, 128  ;;  %p753_p8 = scmp.lt.s32.totalorder %s77_s20, %s77_s20 }
  0x4d   :  { %p749_p7 = scmp.ne.s32.totalorder %s77_s20, %s748_s19  ;;  %p754_p9 = scmp.lt.s32.totalorder %s748_s19, %s748_s19 }
  0x4f   :  { %p755_p10 = por %p754_p9, %p753_p8 }
  0x51   :  { %p756_p11 = pnand %p755_p10, %p749_p7 }
  0x53   :  { %759 = shalt.err (!%p756_p11)
}
  0x54   :  { %79 = dma.hbm_to_vmem [thread:$0]  %s1015_s6, 128, %s77_s20, [#allocation10]  }
  0x55   :  { %s821_s22 = smov [#allocation12]   ;;  %s760_s23 = scalar_lea.hbm %s1016_s7, 16 }
  0x56   :  { %s86_s17 = sshll.u32 %s821_s22, 4  ;;  %p761_p12 = scmp.ne.s32.totalorder %s1016_s7, %s760_s23  ;;  %s87_s17 = int_to_ptr.vmem [resolvable:$true] %s86_s17 }
  0x57   :  { %p764_p13 = scmp.lt.u32.totalorder %s760_s23, %s1016_s7 }
  0x59   :  { %p766_p0 = pnand %p764_p13, %p761_p12 }
  0x5b   :  { %769 = shalt.err (!%p766_p0)
}
  0x5c   :  { %s770_s0 = scalar_lea.vmem %s87_s17, 16  ;;  %s774_s6 = scalar_lea.vmem %s87_s17, 32 }
  0x5d   :  { %p771_p1 = scmp.ne.s32.totalorder %s87_s17, %s770_s0  ;;  %p775_p2 = scmp.lt.s32.totalorder %s87_s17, %s87_s17 }
  0x5e   :  { %p776_p3 = scmp.lt.s32.totalorder %s774_s6, %s770_s0 }
  0x60   :  { %p777_p4 = por %p776_p3, %p775_p2 }
  0x62   :  { %p778_p5 = pnand %p777_p4, %p771_p1 }
  0x64   :  { %781 = shalt.err (!%p778_p5)
}
  0x65   :  { %89 = dma.hbm_to_vmem [thread:$0]  %s1016_s7, 16, %s87_s17, [#allocation13]  }
  0x66   :  { %804 = dma.done.wait [#allocation4], 64  }
  0x67   :  { %805 = vsyncadd [#allocation4], 4294967232 }
  0x68   :  { %806 = dma.done.wait [#allocation7], 384  }
  0x69   :  { %807 = vsyncadd [#allocation7], 4294966912 }
  0x6a   :  { %808 = dma.done.wait [#allocation10], 640  }
  0x6b   :  { %809 = vsyncadd [#allocation10], 4294966656 }
  0x6c   :  { %810 = dma.done.wait [#allocation13], 16  }
  0x6d   :  { %811 = vsyncadd [#allocation13], 4294967280  ;;  %v822_v0 = vmov 0.0|0.0   ;;  %vm823_vm0 = vmmov 0   ;;  %v824_v1 = vmov 0.0   ;;  %v115_v2 = vld [vmem:[#allocation8] sm:$0xff]  ;;  %v454_v39 = vstv %s1019_s10 }
  0x6e   :  { %617 = vmatprep.subr.bf16.mxu0 %v822_v0  ;;  %582 = vmatprep.mubr.msk.f32.mxu0 %vm823_vm0, %v824_v1  ;;  %v116_v3 = vld [vmem:[#allocation8 + $0x8] sm:$0xff]  ;;  %v114_v5 = vld [vmem:[#allocation3] sm:$0xf]  ;;  %vm124_vm1 = vcmask 130048   ;;  %v284_v7 = vld [vmem:[#allocation6] sm:$0xff]  ;;  %vm293_vm2 = vcmask 64512  }
  0x6f   :  { %620 = vmatprep.subr.bf16.mxu1 %v822_v0  ;;  %593 = vmatprep.mubr.msk.f32.mxu1 %vm823_vm0, %v824_v1  ;;  %v618_v4 = vpack.c.bf16 %v116_v3, %v115_v2  ;;  %v285_v6 = vld [vmem:[#allocation11] sm:$0xff]  ;;  %v200_v9 = vld [vmem:[#allocation9 + $0x8] sm:$0xff]  ;;  %v201_v11 = vld [vmem:[#allocation9 + $0x10] sm:$0xff]  ;;  %vm210_vm3 = vcmask 261120   ;;  %s825_s21 = smov [#allocation14]   ;;  %vm531_vm4 = vcmask 60416  }
  0x70   :  { %v199_v8 = vld [vmem:[#allocation9] sm:$0xff]  ;;  %v202_v12 = vld [vmem:[#allocation9 + $0x18] sm:$0xff]  ;;  %v369_v15 = vld [vmem:[%s1017_s8 + $0x8] sm:$0xff] }
  0x71   :  { %619 = vmatpush3.bf16.msra.mxu0 %v618_v4  ;;  %v621_v10 = vpack.c.bf16 %v200_v9, %v199_v8  ;;  %v368_v13 = vld [vmem:[%s1017_s8] sm:$0xff]  ;;  %v624_v14 = vpack.c.bf16 %v202_v12, %v201_v11  ;;  %v370_v17 = vld [vmem:[%s1017_s8 + $0x10] sm:$0xff]  ;;  %v371_v18 = vld [vmem:[%s1017_s8 + $0x18] sm:$0xff] }
  0x72   :  { %596 = vmatprep.subr.mxu0 %v824_v1  ;;  %v627_v16 = vpack.c.bf16 %v369_v15, %v368_v13  ;;  %v630_v19 = vpack.c.bf16 %v371_v18, %v370_v17  ;;  %v551_v20 = vld [vmem:[%s1012_s3] ss:$0 sm:$0xff]  ;;  %v555_v24 = vld [vmem:[#allocation12] ss:$0 sm:$0xff] }
  0x73   :  { %622 = vmatpush3.bf16.msra.mxu1 %v621_v10  ;;  %v557_v32 = vld [vmem:[%s1018_s9] ss:$0 sm:$0xff]  ;;  %s539_s9 = sshll.u32 %s825_s21, 4  ;;  %s540_s9 = int_to_ptr.vmem [resolvable:$true] %s539_s9 }
  0x74   :  { %583 = vmatmul.mubr.msk.f32.vlgmr.msra.gmra.mrb[0].mxu0 %vm124_vm1, %v114_v5  ;;  %623 = vmatprep.subr.bf16.mxu1 %v822_v0  ;;  %v553_v36 = vld [vmem:[%s1014_s5] ss:$0 sm:$0xff]  ;;  %s782_s1 = scalar_lea.vmem %s540_s9, 64  ;;  %p787_p7 = scmp.lt.s32.totalorder %s540_s9, %s540_s9 }
  0x75   :  { %597 = vmatpush3.msra.mxu0 %v285_v6  ;;  %598 = vmatprep.mubr.msk.f32.mxu0 %vm823_vm0, %v824_v1  ;;  %p783_p6 = scmp.ne.s32.totalorder %s540_s9, %s782_s1  ;;  %p788_p8 = scmp.lt.s32.totalorder %s782_s1, %s782_s1 }
  0x76   :  { %626 = vmatprep.subr.bf16.mxu0 %v822_v0 }
  0x77   :  { %625 = vmatpush3.bf16.msra.mxu1 %v624_v14  ;;  %p789_p9 = por %p788_p8, %p787_p7 }
  0x78   :  { %599 = vmatmul.mubr.msk.f32.vlgmr.msra.gmra.mrb[2].mxu0 %vm293_vm2, %v284_v7  ;;  %612 = vmatprep.subr.mxu1 %v824_v1 }
  0x79   :  { %609 = vmatprep.mubr.msk.f32.mxu0 %vm823_vm0, %v824_v1  ;;  %628 = vmatpush3.bf16.msra.mxu0 %v627_v16  ;;  %p790_p10 = pnand %p789_p9, %p783_p6 }
  0x7a   :  { %629 = vmatprep.subr.bf16.mxu0 %v822_v0 }
  0x7d   :  { %631 = vmatpush3.bf16.msra.mxu0 %v630_v19 }
 0x147   :  { %v194_v21 = vpop.f32.mrb[0].mxu0 }
 0x148   :  { %v195_v22 = vadd.f32 %v551_v20, %v194_v21  ;;  %v584_v23 = vpop.f32.mrb[1].mxu0 }
 0x14a   :  { %644 = vtanh.f32 %v195_v22 }
 0x14b   :  { %v363_v25 = vpop.f32.mrb[2].mxu0 }
 0x14c   :  { %v364_v26 = vadd.f32 %v555_v24, %v363_v25  ;;  %v600_v27 = vpop.f32.mrb[3].mxu0 }
 0x14e   :  { %646 = vtanh.f32 %v364_v26 }
 0x154   :  { %v645_v28 = vpop.eup %644 }
 0x155   :  { %594 = vmatmul.mubr.msk.f32.vlgmr.msra.gmra.mrb[0].mxu1 %vm210_vm3, %v645_v28 }
 0x156   :  { %614 = vmatprep.mubr.msk.f32.mxu1 %vm823_vm0, %v824_v1 }
 0x158   :  { %v647_v29 = vpop.eup %646 }
 0x159   :  { %610 = vmatmul.mubr.msk.f32.vlgmr.msra.gmra.mrb[4].mxu0 %vm210_vm3, %v647_v29 }
 0x228   :  { %v280_v30 = vpop.f32.mrb[0].mxu1 }
 0x229   :  { %v595_v31 = vpop.f32.mrb[1].mxu1  ;;  %v281_v38 = vadd.f32 %v553_v36, %v280_v30 }
 0x22c   :  { %v448_v33 = vpop.f32.mrb[4].mxu0 }
 0x22d   :  { %v449_v34 = vadd.f32 %v557_v32, %v448_v33  ;;  %v611_v35 = vpop.f32.mrb[5].mxu0 }
 0x22f   :  { %648 = vtanh.f32 %v449_v34 }
 0x239   :  { %v649_v37 = vpop.eup %648 }
 0x23a   :  { %613 = vmatpush3.xpose.msk.msra.mxu1 %vm210_vm3, %v649_v37 }
 0x23d   :  { %615 = vmatmul.mubr.msk.f32.vlgmr.msra.gmra.mrb[2].mxu1 %vm210_vm3, %v281_v38 }
 0x310   :  { %v527_v40 = vpop.f32.mrb[2].mxu1 }
 0x311   :  { %v528_v41 = vadd.f32 %v527_v40, %v454_v39  ;;  %v616_v42 = vpop.f32.mrb[3].mxu1 }
 0x313   :  { %532 = vst.msk [vmem:[#allocation14] sm:$0xf] %vm531_vm4, %v528_v41 }
 0x314   :  { %793 = shalt.err (!%p790_p10)
}
 0x315   :  { %s794_s24 = scalar_lea.hbm %s1020_s11, 64 }
 0x316   :  { %p795_p11 = scmp.ne.s32.totalorder %s1020_s11, %s794_s24  ;;  %p798_p12 = scmp.lt.u32.totalorder %s794_s24, %s1020_s11 }
 0x318   :  { %p800_p13 = pnand %p798_p12, %p795_p11 }
 0x31a   :  { %803 = shalt.err (!%p800_p13)
}
 0x31b   :  { %542 = dma.vmem_to_hbm [thread:$0]  %s540_s9, 64, %s1020_s11, [#allocation5]  }
 0x31c   :  { %812 = dma.done.wait [#allocation5], 64  }
 0x31d   :  { %813 = vsyncadd [#allocation5], 4294967232 }
 0x31e   :  { %546 = vsyncpa [#allocation4], 1 }
 0x31f   :  { %547 = vsyncpa [#allocation7], 1 }
 0x320   :  { %548 = vsyncpa [#allocation10], 1 }
 0x321   :  { %549 = vsyncpa [#allocation13], 1 }
 0x322   :  { %550 = vsyncpa [#allocation5], 1 }

</bundles_post_ra>
